<compile_context>
chip_gen: v7x
topology: tpu7x:2x2x1
jax: 0.10.0
libtpu: 0.0.40
codegen_flags: <defaults>
</compile_context>

<pallas_src>
import numpy as np
import jax
import jax.numpy as jnp
from jax import lax
from jax.experimental import pallas as pl
from jax.experimental.pallas import tpu as pltpu


# ----------------------------------------------------------------------------
# Kernels
# ----------------------------------------------------------------------------
def _make_template_kernel(size: int):
    """use_coordinates_input=True path: build the shared (2*dim, S*S) template.

    const_ref   : (dim, S2)  learned constant, flattened spatially (p = i*S + j)
    wparams_ref : (dim, 3)   [W[:,0] | W[:,1] | bias] of the Linear(2, dim)
    out_ref     : (2*dim, S2) channels 0:dim = const, dim:2*dim = sin(Linear(coords))
    """
    is_pow2 = size >= 1 and (size & (size - 1)) == 0
    shift = int(np.log2(size)) if is_pow2 else 0
    mask = size - 1

    def kernel(const_ref, wparams_ref, out_ref):
        dim, s2 = const_ref.shape
        # lane index p = i*size + j ; torch semantics: x = row[j], y = row[i],
        # row[k] = k/size*2 - 1.
        p = lax.broadcasted_iota(jnp.int32, (1, s2), 1)
        if is_pow2:
            iy = jnp.right_shift(p, shift)           # row index i
            jx = jnp.bitwise_and(p, mask)            # col index j
            x = jx.astype(jnp.float32) * (2.0 / size) - 1.0
            y = iy.astype(jnp.float32) * (2.0 / size) - 1.0
        else:
            pf = p.astype(jnp.float32)
            iyf = jnp.floor(pf / size)
            x = (pf - iyf * size) * (2.0 / size) - 1.0
            y = iyf * (2.0 / size) - 1.0

        wx = wparams_ref[:, 0:1]                     # (dim, 1)
        wy = wparams_ref[:, 1:2]                     # (dim, 1)
        b = wparams_ref[:, 2:3]                      # (dim, 1)

        # Linear(2, dim) as a VPU outer product -- no MXU for a K=2 contraction.
        embs = jnp.sin(wx * x + wy * y + b)          # (dim, s2)

        # Single full-block, lane-dense store of the shared template.
        out_ref[...] = jnp.concatenate(
            [const_ref[...], embs], axis=0).astype(out_ref.dtype)

    return kernel


def _const_copy_kernel(const_ref, out_ref):
    """use_coordinates_input=False path: the template is just the constant."""
    out_ref[...] = const_ref[...].astype(out_ref.dtype)


# ----------------------------------------------------------------------------
# Wrapper
# ----------------------------------------------------------------------------
def coord_based_constant_input(x, const_param, weight, bias,
                               use_coordinates_input: bool = True,
                               out_dtype=jnp.float32):
    """Forward of CoordBasedConstantInput.  `x` is only used for its batch size.

    The Pallas kernel produces the batch-invariant template once; the batch
    broadcast is a plain XLA broadcast in the wrapper so it can fuse downstream
    instead of being materialized B times by the kernel.
    """
    batch = x.shape[0]
    _, dim, size, _ = const_param.shape
    s2 = size * size
    itemsize_out = jnp.dtype(out_dtype).itemsize
    const_flat = const_param.reshape(dim, s2).astype(jnp.float32)

    if not use_coordinates_input:
        tmpl = pl.pallas_call(
            _const_copy_kernel,
            out_shape=jax.ShapeDtypeStruct((dim, s2), out_dtype),
            grid=(1,),
            in_specs=[pl.BlockSpec((dim, s2), lambda i: (0, 0))],
            out_specs=pl.BlockSpec((dim, s2), lambda i: (0, 0)),
            cost_estimate=pl.CostEstimate(
                flops=0, transcendentals=0,
                bytes_accessed=dim * s2 * 4 + dim * s2 * itemsize_out),
            compiler_params=pltpu.CompilerParams(
                dimension_semantics=("arbitrary",)),
        )(const_flat)
        tmpl = tmpl.reshape(1, dim, size, size)
        return jnp.broadcast_to(tmpl, (batch, dim, size, size))

    # Pack [W[:,0], W[:,1], bias] into one (dim, 3) tile (one padded VMEM tile
    # instead of three).
    wparams = jnp.concatenate(
        [weight.astype(jnp.float32), bias.reshape(dim, 1).astype(jnp.float32)],
        axis=1)

    tmpl = pl.pallas_call(
        _make_template_kernel(size),
        out_shape=jax.ShapeDtypeStruct((2 * dim, s2), out_dtype),
        grid=(1,),
        in_specs=[
            pl.BlockSpec((dim, s2), lambda i: (0, 0)),   # const
            pl.BlockSpec((dim, 3), lambda i: (0, 0)),    # [wx | wy | bias]
        ],
        out_specs=pl.BlockSpec((2 * dim, s2), lambda i: (0, 0)),
        cost_estimate=pl.CostEstimate(
            flops=4 * dim * s2,                 # 2 mul + 2 add per embedding elem
            transcendentals=dim * s2,           # sin
            bytes_accessed=(dim * s2 + dim * 3) * 4 + 2 * dim * s2 * itemsize_out),
        compiler_params=pltpu.CompilerParams(
            dimension_semantics=("arbitrary",)),
    )(const_flat, wparams)

    tmpl = tmpl.reshape(1, 2 * dim, size, size)
    return jnp.broadcast_to(tmpl, (batch, 2 * dim, size, size))


# ----------------------------------------------------------------------------
# Pure-JAX reference (mirrors the PyTorch forward exactly)
# ----------------------------------------------------------------------------
def _generate_coords_flat(size: int) -> jnp.ndarray:
    """Matches generate_coords(): for p = i*size + j, coord = (row[j], row[i])."""
    row = (jnp.arange(size, dtype=jnp.float32) / size) * 2.0 - 1.0
    xs = jnp.tile(row, (size,))      # x coordinate = row[j]
    ys = jnp.repeat(row, size)       # y coordinate = row[i]
    return jnp.stack([xs, ys], axis=0)  # (2, S*S)


def reference(x, const_param, weight, bias):
    batch = x.shape[0]
    _, dim, size, _ = const_param.shape
    const_out = jnp.broadcast_to(const_param, (batch, dim, size, size))
    coords = _generate_coords_flat(size)                        # (2, S2)
    coords_btc = jnp.broadcast_to(coords.T[None], (batch, size * size, 2))
    embs = jnp.sin(coords_btc @ weight.T + bias)                # (B, S2, dim)
    embs = jnp.transpose(embs, (0, 2, 1)).reshape(batch, dim, size, size)
    return jnp.concatenate([const_out, embs], axis=1)


# ----------------------------------------------------------------------------
if __name__ == "__main__":
    DIM, SIZE, BATCH = 32, 16, 2

    key = jax.random.PRNGKey(0)
    k_const, k_w, k_b, k_x = jax.random.split(key, 4)

    # nn.Parameter(torch.randn(1, dim, size, size))
    const_param = jax.random.normal(k_const, (1, DIM, SIZE, SIZE), dtype=jnp.float32)
    # nn.Linear(2, dim) weight ~ U(-sqrt(9/dim), sqrt(9/dim)); bias given a small
    # nonzero value so the bias path is numerically exercised.
    lim = float(np.sqrt(9.0 / DIM))
    weight = jax.random.uniform(k_w, (DIM, 2), minval=-lim, maxval=lim,
                                dtype=jnp.float32)
    bias = 0.1 * jax.random.normal(k_b, (DIM,), dtype=jnp.float32)

    # the module only reads input.shape[0]; use a small latent as the input
    x = jax.random.normal(k_x, (BATCH, 64), dtype=jnp.float32)

    out = coord_based_constant_input(x, const_param, weight, bias,
                                     use_coordinates_input=True)
    out = jax.block_until_ready(out)
    ref = reference(x, const_param, weight, bias)
    assert out.shape == (BATCH, 2 * DIM, SIZE, SIZE), out.shape
    np.testing.assert_allclose(np.asarray(out), np.asarray(ref),
                               rtol=1e-5, atol=1e-5)

    # odd batch size (no longer flows through any kernel tiling, but lock it in)
    x3 = jax.random.normal(k_x, (3, 64), dtype=jnp.float32)
    out3 = jax.block_until_ready(
        coord_based_constant_input(x3, const_param, weight, bias,
                                   use_coordinates_input=True))
    np.testing.assert_allclose(np.asarray(out3),
                               np.asarray(reference(x3, const_param, weight, bias)),
                               rtol=1e-5, atol=1e-5)

    # default (use_coordinates_input=False) repeat-only path
    out_const = jax.block_until_ready(
        coord_based_constant_input(x, const_param, weight, bias,
                                   use_coordinates_input=False))
    np.testing.assert_allclose(
        np.asarray(out_const),
        np.broadcast_to(np.asarray(const_param), (BATCH, DIM, SIZE, SIZE)),
        rtol=0, atol=0)

    print("KERNEL_OK")
</pallas_src>

<mosaic_0001>
module attributes {stable_mosaic.version = 11 : i64} {
  func.func @kernel(%arg0: i32, %arg1: memref<32x256xf32, #tpu.memory_space<vmem>>, %arg2: memref<32x3xf32, #tpu.memory_space<vmem>>, %arg3: memref<64x256xf32, #tpu.memory_space<vmem>>) attributes {dimension_semantics = [#tpu.dimension_semantics<arbitrary>], iteration_bounds = array<i64: 1>, scalar_prefetch = 0 : i64, scratch_operands = 0 : i64, tpu.core_type = #tpu.core_type<tc>, window_params = [{pipeline_mode = #tpu.pipeline_mode<synchronous>, transform_indices = @transform_0, window_bounds = array<i64: 32, 256>}, {pipeline_mode = #tpu.pipeline_mode<synchronous>, transform_indices = @transform_1, window_bounds = array<i64: 32, 3>}, {pipeline_mode = #tpu.pipeline_mode<synchronous>, transform_indices = @transform_2, window_bounds = array<i64: 64, 256>}]} {
    %0 = tpu.iota {dimensions = array<i32: 1>} : vector<1x256xi32>
    %c4_i32 = arith.constant 4 : i32
    %1 = vector.broadcast %c4_i32 : i32 to vector<1x256xi32>
    %2 = arith.shrsi %0, %1 : vector<1x256xi32>
    %c15_i32 = arith.constant 15 : i32
    %3 = vector.broadcast %c15_i32 : i32 to vector<1x256xi32>
    %4 = arith.andi %0, %3 : vector<1x256xi32>
    %5 = arith.sitofp %4 : vector<1x256xi32> to vector<1x256xf32>
    %cst = arith.constant 1.250000e-01 : f32
    %6 = vector.broadcast %cst : f32 to vector<1x256xf32>
    %7 = arith.mulf %5, %6 : vector<1x256xf32>
    %cst_0 = arith.constant 1.000000e+00 : f32
    %8 = vector.broadcast %cst_0 : f32 to vector<1x256xf32>
    %9 = arith.subf %7, %8 : vector<1x256xf32>
    %10 = arith.sitofp %2 : vector<1x256xi32> to vector<1x256xf32>
    %cst_1 = arith.constant 1.250000e-01 : f32
    %11 = vector.broadcast %cst_1 : f32 to vector<1x256xf32>
    %12 = arith.mulf %10, %11 : vector<1x256xf32>
    %cst_2 = arith.constant 1.000000e+00 : f32
    %13 = vector.broadcast %cst_2 : f32 to vector<1x256xf32>
    %14 = arith.subf %12, %13 : vector<1x256xf32>
    %c0 = arith.constant 0 : index
    %c0_3 = arith.constant 0 : index
    %15 = vector.load %arg2[%c0, %c0_3] : memref<32x3xf32, #tpu.memory_space<vmem>>, vector<32x1xf32>
    %c0_4 = arith.constant 0 : index
    %c1 = arith.constant 1 : index
    %16 = vector.load %arg2[%c0_4, %c1] : memref<32x3xf32, #tpu.memory_space<vmem>>, vector<32x1xf32>
    %c0_5 = arith.constant 0 : index
    %c2 = arith.constant 2 : index
    %17 = vector.load %arg2[%c0_5, %c2] : memref<32x3xf32, #tpu.memory_space<vmem>>, vector<32x1xf32>
    %18 = vector.broadcast %15 : vector<32x1xf32> to vector<32x256xf32>
    %19 = vector.broadcast %9 : vector<1x256xf32> to vector<32x256xf32>
    %20 = arith.mulf %18, %19 : vector<32x256xf32>
    %21 = vector.broadcast %16 : vector<32x1xf32> to vector<32x256xf32>
    %22 = vector.broadcast %14 : vector<1x256xf32> to vector<32x256xf32>
    %23 = arith.mulf %21, %22 : vector<32x256xf32>
    %24 = arith.addf %20, %23 : vector<32x256xf32>
    %25 = vector.broadcast %17 : vector<32x1xf32> to vector<32x256xf32>
    %26 = arith.addf %24, %25 : vector<32x256xf32>
    %27 = math.sin %26 : vector<32x256xf32>
    %c0_6 = arith.constant 0 : index
    %c0_7 = arith.constant 0 : index
    %28 = vector.load %arg1[%c0_6, %c0_7] : memref<32x256xf32, #tpu.memory_space<vmem>>, vector<32x256xf32>
    %29 = tpu.concatenate %28, %27 in 0 : vector<32x256xf32>, vector<32x256xf32> -> vector<64x256xf32>
    %c0_8 = arith.constant 0 : index
    %c0_9 = arith.constant 0 : index
    %30 = vector.load %arg3[%c0_8, %c0_9] : memref<64x256xf32, #tpu.memory_space<vmem>>, vector<64x256xf32>
    tpu.vector_store %arg3[%c0_8, %c0_9], %29 {strides = array<i32>} : memref<64x256xf32, #tpu.memory_space<vmem>>, vector<64x256xf32>,
    return
  }
  func.func @transform_0(%arg0: i32) -> (i32, i32) {
    %c0_i32 = arith.constant 0 : i32
    %c0_i32_0 = arith.constant 0 : i32
    %c0_i32_1 = arith.constant 0 : i32
    return %c0_i32, %c0_i32_0 : i32, i32
  }
  func.func @transform_1(%arg0: i32) -> (i32, i32) {
    %c0_i32 = arith.constant 0 : i32
    %c0_i32_0 = arith.constant 0 : i32
    %c0_i32_1 = arith.constant 0 : i32
    return %c0_i32, %c0_i32_0 : i32, i32
  }
  func.func @transform_2(%arg0: i32) -> (i32, i32) {
    %c0_i32 = arith.constant 0 : i32
    %c0_i32_0 = arith.constant 0 : i32
    %c0_i32_1 = arith.constant 0 : i32
    return %c0_i32, %c0_i32_0 : i32, i32
  }
}

</mosaic_0001>

<bundles_post_ra>
// kernel: tpu_custom_call.1
= control target key start
LH: loop header
LB: loop body
LE: loop exit
PB: predicated region body
PF: predicated region fallthrough
CT: control target
= control target key end

     0   :  { %7 = vsyncpa [#allocation3], 0  ;;  %s1883_s0 = inlined_call_operand.hbm [shape: f32[32,256], index: 0, kind: input, shape index: {}]   ;;  %s1884_s1 = inlined_call_operand.vmem [shape: f32[32,3], index: 1, kind: input, shape index: {}]   ;;  %s1885_s2 = inlined_call_operand.hbm [shape: f32[64,256], index: 2, kind: output, shape index: {}]  }
   0x1   :  { %8 = vsyncpa [#allocation4], 0  ;;  %s1173_s9 = smov [#allocation2]   ;;  %s1125_s13 = scalar_lea.hbm %s1883_s0, 1024 }
   0x2   :  { %s14_s10 = sshll.u32 %s1173_s9, 4  ;;  %p1126_p0 = scmp.ne.s32.totalorder %s1883_s0, %s1125_s13  ;;  %s15_s10 = int_to_ptr.vmem [resolvable:$true] %s14_s10 }
   0x3   :  { %p1129_p1 = scmp.lt.u32.totalorder %s1125_s13, %s1883_s0 }
   0x5   :  { %p1131_p2 = pnand %p1129_p1, %p1126_p0 }
   0x7   :  { %1134 = shalt.err (!%p1131_p2)
}
   0x8   :  { %s1135_s18 = scalar_lea.vmem %s15_s10, 1024  ;;  %p1140_p4 = scmp.lt.s32.totalorder %s15_s10, %s15_s10 }
   0x9   :  { %p1136_p3 = scmp.ne.s32.totalorder %s15_s10, %s1135_s18  ;;  %p1141_p5 = scmp.lt.s32.totalorder %s1135_s18, %s1135_s18 }
   0xb   :  { %p1142_p6 = por %p1141_p5, %p1140_p4 }
   0xd   :  { %p1143_p7 = pnand %p1142_p6, %p1136_p3 }
   0xf   :  { %1146 = shalt.err (!%p1143_p7)
}
  0x10   :  { %s1174_s19 = smov 256   ;;  %s1175_s20 = smov 16  }
  0x11   :  { %20 = dma.hbm_to_vmem [thread:$0]  %s1883_s0, 1024, %s15_s10, [#allocation3], %s1174_s19, %s1174_s19, %s1175_s20  }
  0x12   :  { %1169 = dma.done.wait [#allocation3], 1024  }
  0x13   :  { %1170 = vsyncadd [#allocation3], 4294966272  ;;  %v1176_v0 = vmov 0   ;;  %v47_v1 = vld [vmem:[%s1884_s1 + $0x10] sm:$0xff]  ;;  %v45_v2 = vld [vmem:[%s1884_s1] sm:$0xff]  ;;  %v1177_v5 = vmov 1   ;;  %v26_v7 = vlaneseq }
  0x14   :  { %1088 = vset.pattern.permute.xlu1 %v1176_v0  ;;  %1087 = vset.pattern.permute.xlu0 %v1176_v0  ;;  %v48_v3 = vld [vmem:[%s1884_s1 + $0x18] sm:$0xff]  ;;  %v46_v4 = vld [vmem:[%s1884_s1 + $0x8] sm:$0xff]  ;;  %v1178_v6 = vmov 2   ;;  %s1185_s1 = smov [#allocation5]  }
  0x15   :  { %61 = vperm.xlu1 %1088, %v47_v1   ;;  %51 = vperm.xlu0 %1087, %v45_v2   ;;  %v27_v8 = vand.u32 127, %v26_v7  ;;  %s994_s30 = sshll.u32 %s1185_s1, 4  ;;  %s995_s30 = int_to_ptr.vmem [resolvable:$true] %s994_s30 }
  0x16   :  { %s1147_s3 = scalar_lea.vmem %s995_s30, 2048  ;;  %p1152_p9 = scmp.lt.s32.totalorder %s995_s30, %s995_s30 }
  0x17   :  { %v28_v9 = vadd.s32 128, %v27_v8  ;;  %v31_v10 = vand.u32 15, %v27_v8  ;;  %v29_v18 = vshra.s32 %v27_v8, 4  ;;  %p1148_p8 = scmp.ne.s32.totalorder %s995_s30, %s1147_s3  ;;  %p1153_p10 = scmp.lt.s32.totalorder %s1147_s3, %s1147_s3 }
  0x19   :  { %66 = vperm.xlu1 %1088, %v48_v3   ;;  %56 = vperm.xlu0 %1087, %v46_v4   ;;  %v32_v11 = vand.u32 15, %v28_v9  ;;  %v33_v12 = vcvt.s32.f32 %v31_v10  ;;  %v30_v19 = vshra.s32 %v28_v9, 4  ;;  %v39_v24 = vcvt.s32.f32 %v29_v18  ;;  %p1154_p11 = por %p1153_p10, %p1152_p9 }
  0x1b   :  { %v34_v13 = vcvt.s32.f32 %v32_v11  ;;  %v35_v14 = vmul.f32 0.125, %v33_v12  ;;  %v40_v25 = vcvt.s32.f32 %v30_v19  ;;  %v41_v30 = vmul.f32 0.125, %v39_v24  ;;  %p1155_p12 = pnand %p1154_p11, %p1148_p8 }
  0x1d   :  { %1090 = vset.pattern.permute.xlu1 %v1177_v5  ;;  %1089 = vset.pattern.permute.xlu0 %v1177_v5  ;;  %v36_v15 = vmul.f32 0.125, %v34_v13  ;;  %v1006_v16 = vadd.f32 -1.0, %v35_v14  ;;  %v42_v31 = vmul.f32 0.125, %v40_v25  ;;  %v1008_v32 = vadd.f32 -1.0, %v41_v30 }
  0x1e   :  { %82 = vperm.xlu1 %1090, %v46_v4   ;;  %78 = vperm.xlu0 %1089, %v45_v2  }
  0x1f   :  { %v1007_v17 = vadd.f32 -1.0, %v36_v15  ;;  %v1009_v33 = vadd.f32 -1.0, %v42_v31 }
  0x22   :  { %86 = vperm.xlu1 %1090, %v47_v1   ;;  %90 = vperm.xlu0 %1089, %v48_v3  }
  0x26   :  { %1091 = vset.pattern.permute.xlu1 %v1178_v6  ;;  %1092 = vset.pattern.permute.xlu0 %v1178_v6 }
  0x27   :  { %110 = vperm.xlu1 %1091, %v45_v2   ;;  %114 = vperm.xlu0 %1092, %v46_v4  }
  0x2b   :  { %118 = vperm.xlu1 %1091, %v47_v1  }
  0x2f   :  { %122 = vperm.xlu1 %1091, %v48_v3  }
  0x94   :  { %v62_v20 = vpop.permute.xlu1 %61  ;;  %v52_v21 = vpop.permute.xlu0 %51 }
  0x95   :  { %v73_v22 = vmul.f32 %v1006_v16, %v62_v20  ;;  %v74_v23 = vmul.f32 %v1007_v17, %v62_v20  ;;  %v69_v36 = vmul.f32 %v1006_v16, %v52_v21  ;;  %v70_v37 = vmul.f32 %v1007_v17, %v52_v21 }
  0x98   :  { %v67_v26 = vpop.permute.xlu1 %66  ;;  %v57_v27 = vpop.permute.xlu0 %56 }
  0x99   :  { %v75_v28 = vmul.f32 %v1006_v16, %v67_v26  ;;  %v76_v29 = vmul.f32 %v1007_v17, %v67_v26  ;;  %v71_v38 = vmul.f32 %v1006_v16, %v57_v27  ;;  %v72_v60 = vmul.f32 %v1007_v17, %v57_v27 }
  0x9d   :  { %v83_v34 = vpop.permute.xlu1 %82  ;;  %v79_v35 = vpop.permute.xlu0 %78 }
  0x9e   :  { %v95_v39 = vmul.f32 %v1008_v32, %v83_v34  ;;  %v93_v40 = vmul.f32 %v1008_v32, %v79_v35  ;;  %v94_v41 = vmul.f32 %v1009_v33, %v79_v35  ;;  %v96_v61 = vmul.f32 %v1009_v33, %v83_v34 }
  0x9f   :  { %v1181_v34 = vmov 2131351028  }
  0xa0   :  { %v101_v52 = vadd.f32 %v93_v40, %v69_v36  ;;  %v102_v53 = vadd.f32 %v94_v41, %v70_v37  ;;  %v103_v55 = vadd.f32 %v95_v39, %v71_v38  ;;  %v104_v8 = vadd.f32 %v96_v61, %v72_v60 }
  0xa1   :  { %v87_v42 = vpop.permute.xlu1 %86  ;;  %v91_v43 = vpop.permute.xlu0 %90  ;;  %v1182_v36 = vmov 2102212464   ;;  %v1183_v38 = vmov 920167782  }
  0xa2   :  { %v97_v44 = vmul.f32 %v1008_v32, %v87_v42  ;;  %v98_v45 = vmul.f32 %v1009_v33, %v87_v42  ;;  %v99_v46 = vmul.f32 %v1008_v32, %v91_v43  ;;  %v100_v47 = vmul.f32 %v1009_v33, %v91_v43 }
  0xa3   :  { %v1180_v32 = vmov 2475754826  }
  0xa4   :  { %v1228_v48 = vadd.f32 %v97_v44, %v73_v22  ;;  %v1230_v49 = vadd.f32 %v98_v45, %v74_v23  ;;  %v1232_v50 = vadd.f32 %v99_v46, %v75_v28  ;;  %v1234_v51 = vadd.f32 %v100_v47, %v76_v29 }
  0xa5   :  { %v1179_v28 = vmov 683565275   ;;  %v1184_v45 = vmov 1326507024  }
  0xa6   :  { %v111_v54 = vpop.permute.xlu1 %110  ;;  %v115_v56 = vpop.permute.xlu0 %114 }
  0xa7   :  { %v1236_v57 = vadd.f32 %v111_v54, %v101_v52  ;;  %v1238_v58 = vadd.f32 %v111_v54, %v102_v53  ;;  %v1240_v59 = vadd.f32 %v115_v56, %v103_v55  ;;  %v1251_v13 = vadd.f32 %v115_v56, %v104_v8 }
  0xa9   :  { %v133_v62 = vand.u32 2147483647, %v1236_v57  ;;  %v136_v63 = vand.u32 2139095040, %v1236_v57  ;;  %v237_v0 = vand.u32 2147483647, %v1238_v58  ;;  %v240_v1 = vand.u32 2139095040, %v1238_v58 }
  0xaa   :  { %v344_v6 = vand.u32 2139095040, %v1240_v59  ;;  %v341_v16 = vand.u32 2147483647, %v1240_v59  ;;  %v448_v26 = vand.u32 2139095040, %v1251_v13  ;;  %vm135_vm13 = vcmp.lt.s32.totalorder %v1236_v57, 0 }
  0xab   :  { %v137_v2 = vshrl.u32 %v136_v63, 23  ;;  %v140_v3 = vand.u32 8388607, %v133_v62  ;;  %v241_v4 = vshrl.u32 %v240_v1, 23  ;;  %v244_v5 = vand.u32 8388607, %v237_v0 }
  0xac   :  { %v345_v10 = vshrl.u32 %v344_v6, 23  ;;  %v1260_v24 = vand.u32 8388607, %v341_v16  ;;  %vm1350_vm14 = vcmp.le.f32.partialorder %v133_v62, 0.7853982 }
  0xad   :  { %v1010_v7 = vadd.s32 4294967169, %v137_v2  ;;  %v1014_v9 = vadd.s32 4294967169, %v241_v4  ;;  %v141_v11 = vor.u32 8388608, %v140_v3  ;;  %v245_v14 = vor.u32 8388608, %v244_v5 }
  0xae   :  { %v1018_v17 = vadd.s32 4294967169, %v345_v10 }
  0xaf   :  { %v143_v12 = vadd.s32 1, %v1010_v7  ;;  %v247_v15 = vadd.s32 1, %v1014_v9  ;;  %v1254_v21 = vshll.u32 %v141_v11, 8  ;;  %v1256_v23 = vshll.u32 %v245_v14, 8 }
  0xb0   :  { %v1262_v25 = vadd.s32 1, %v1018_v17 }
  0xb1   :  { %vm144_vm0 = vcmp.gt.s32.totalorder %v143_v12, 0  ;;  %vm248_vm1 = vcmp.gt.s32.totalorder %v247_v15, 0 }
  0xb2   :  { %v145_v18 = vsel %vm144_vm0, %v143_v12, 0  ;;  %v249_v22 = vsel %vm248_vm1, %v247_v15, 0  ;;  %vm352_vm6 = vcmp.gt.s32.totalorder %v1262_v25, 0 }
  0xb3   :  { %v146_v19 = vshrl.u32 %v145_v18, 5  ;;  %v147_v20 = vand.u32 31, %v145_v18  ;;  %v1266_v30 = vshrl.u32 %v249_v22, 5  ;;  %v251_v31 = vand.u32 31, %v249_v22 }
  0xb5   :  { %v148_v27 = vsub.s32 32, %v147_v20  ;;  %v150_v29 = vshll.u32 %v1179_v28, %v147_v20  ;;  %v153_v33 = vshll.u32 %v1180_v32, %v147_v20  ;;  %v156_v35 = vshll.u32 %v1181_v34, %v147_v20 }
  0xb6   :  { %v159_v37 = vshll.u32 %v1182_v36, %v147_v20  ;;  %v162_v39 = vshll.u32 %v1183_v38, %v147_v20  ;;  %vm165_vm2 = vcmp.lt.s32.totalorder %v146_v19, 1  ;;  %vm166_vm3 = vcmp.lt.s32.totalorder %v146_v19, 2 }
  0xb7   :  { %v151_v40 = vshrl.u32 %v1180_v32, %v148_v27  ;;  %v154_v41 = vshrl.u32 %v1181_v34, %v148_v27  ;;  %v157_v42 = vshrl.u32 %v1182_v36, %v148_v27  ;;  %v149_v43 = vshrl.u32 %v1179_v28, %v148_v27 }
  0xb8   :  { %v160_v44 = vshrl.u32 %v1183_v38, %v148_v27  ;;  %v163_v46 = vshrl.u32 %v1184_v45, %v148_v27  ;;  %v252_v54 = vsub.s32 32, %v251_v31  ;;  %vm167_vm4 = vcmp.lt.s32.totalorder %v146_v19, 3 }
  0xb9   :  { %v152_v47 = vor.u32 %v151_v40, %v150_v29  ;;  %v155_v52 = vor.u32 %v154_v41, %v153_v33  ;;  %v158_v53 = vor.u32 %v157_v42, %v156_v35  ;;  %vm168_vm5 = vcmp.lt.s32.totalorder %v146_v19, 4 }
  0xba   :  { %v161_v55 = vor.u32 %v160_v44, %v159_v37  ;;  %v164_v56 = vor.u32 %v163_v46, %v162_v39  ;;  %v254_v5 = vshll.u32 %v1179_v28, %v251_v31  ;;  %v255_v8 = vshrl.u32 %v1180_v32, %v252_v54 }
  0xbb   :  { %v169_v60 = vsel %vm165_vm2, %v149_v43, %v152_v47  ;;  %v170_v61 = vsel %vm168_vm5, %v158_v53, 2102212464  ;;  %v173_v63 = vsel %vm165_vm2, %v152_v47, %v155_v52  ;;  %v177_v1 = vsel %vm165_vm2, %v155_v52, %v158_v53 }
  0xbc   :  { %v171_v2 = vsel %vm167_vm4, %v155_v52, %v170_v61  ;;  %v174_v3 = vsel %vm168_vm5, %v161_v55, 920167782  ;;  %v178_v4 = vsel %vm168_vm5, %v164_v56, 1326507024  ;;  %v257_v9 = vshll.u32 %v1180_v32, %v251_v31 }
  0xbd   :  { %v175_v6 = vsel %vm167_vm4, %v158_v53, %v174_v3  ;;  %v179_v7 = vsel %vm167_vm4, %v161_v55, %v178_v4  ;;  %v172_v10 = vsel %vm166_vm3, %v169_v60, %v171_v2  ;;  %v258_v14 = vshrl.u32 %v1181_v34, %v252_v54 }
  0xbe   :  { %v176_v11 = vsel %vm166_vm3, %v173_v63, %v175_v6  ;;  %v180_v12 = vsel %vm166_vm3, %v177_v1, %v179_v7  ;;  %v256_v22 = vor.u32 %v255_v8, %v254_v5  ;;  %v260_v29 = vshll.u32 %v1181_v34, %v251_v31 }
  0xbf   :  { %v1290_v15 = vmul.u32.u64.low %v1254_v21, %v180_v12  ;;  %v1291_v17 = vmul.u32.u64.high %v1254_v21, %v180_v12, %v1290_v15  ;;  %v1294_v18 = vmul.u32.u64.low %v1254_v21, %v176_v11  ;;  %v1295_v20 = vmul.u32.u64.high %v1254_v21, %v176_v11, %v1294_v18 }
  0xc0   :  { %v259_v27 = vor.u32 %v258_v14, %v257_v9  ;;  %v261_v33 = vshrl.u32 %v1182_v36, %v252_v54  ;;  %v253_v35 = vshrl.u32 %v1179_v28, %v252_v54  ;;  %v263_v19 = vshll.u32 %v1182_v36, %v251_v31 }
  0xc1   :  { %v264_v37 = vshrl.u32 %v1183_v38, %v252_v54  ;;  %v267_v39 = vshrl.u32 %v1184_v45, %v252_v54  ;;  %v188_v40 = vmul.u32 %v1254_v21, %v172_v10  ;;  %v266_v42 = vshll.u32 %v1183_v38, %v251_v31 }
  0xc2   :  { %v262_v41 = vor.u32 %v261_v33, %v260_v29  ;;  %vm269_vm7 = vcmp.lt.s32.totalorder %v1266_v30, 1  ;;  %vm190_vm8 = vc.u32 %v1291_v17, %v1294_v18  ;;  %v191_v43 = vadd.s32 1, %v1295_v20 }
  0xc3   :  { %v265_v44 = vor.u32 %v264_v37, %v263_v19  ;;  %vm270_vm9 = vcmp.lt.s32.totalorder %v1266_v30, 2  ;;  %v268_v46 = vor.u32 %v267_v39, %v266_v42  ;;  %vm271_vm10 = vcmp.lt.s32.totalorder %v1266_v30, 3 }
  0xc4   :  { %vm272_vm11 = vcmp.lt.s32.totalorder %v1266_v30, 4  ;;  %v277_v47 = vsel %vm269_vm7, %v256_v22, %v259_v27  ;;  %v192_v21 = vsel %vm190_vm8, %v191_v43, %v1295_v20  ;;  %v281_v31 = vsel %vm269_vm7, %v259_v27, %v262_v41 }
  0xc5   :  { %v274_v52 = vsel %vm272_vm11, %v262_v41, 2102212464  ;;  %v278_v53 = vsel %vm272_vm11, %v265_v44, 920167782  ;;  %v193_v54 = vadd.s32 %v192_v21, %v188_v40  ;;  %v273_v55 = vsel %vm269_vm7, %v253_v35, %v256_v22 }
  0xc6   :  { %v279_v56 = vsel %vm271_vm10, %v262_v41, %v278_v53  ;;  %v282_v60 = vsel %vm272_vm11, %v268_v46, 1326507024  ;;  %v275_v61 = vsel %vm271_vm10, %v259_v27, %v274_v52  ;;  %v353_v2 = vsel %vm352_vm6, %v1262_v25, 0 }
  0xc7   :  { %v280_v63 = vsel %vm270_vm9, %v277_v47, %v279_v56  ;;  %v283_v1 = vsel %vm271_vm10, %v265_v44, %v282_v60  ;;  %v194_v3 = vadd.s32 536870912, %v193_v54  ;;  %v445_v9 = vand.u32 2147483647, %v1251_v13 }
  0xc8   :  { %v284_v4 = vsel %vm270_vm9, %v281_v31, %v283_v1  ;;  %v1320_v5 = vmul.u32.u64.low %v1256_v23, %v280_v63  ;;  %v1321_v6 = vmul.u32.u64.high %v1256_v23, %v280_v63, %v1320_v5  ;;  %v276_v11 = vsel %vm270_vm9, %v273_v55, %v275_v61 }
  0xc9   :  { %v1325_v7 = vmul.u32.u64.low %v1256_v23, %v284_v4  ;;  %v1326_v8 = vmul.u32.u64.high %v1256_v23, %v284_v4, %v1325_v7  ;;  %v195_v10 = vshrl.u32 %v194_v3, 30  ;;  %v349_v25 = vor.u32 8388608, %v1260_v24 }
  0xca   :  { %v355_v12 = vand.u32 31, %v353_v2  ;;  %v295_v15 = vadd.s32 1, %v1321_v6  ;;  %v449_v22 = vshrl.u32 %v448_v26, 23  ;;  %v292_v27 = vmul.u32 %v1256_v23, %v276_v11 }
  0xcb   :  { %v196_v14 = vshll.u32 %v195_v10, 30  ;;  %vm294_vm12 = vc.u32 %v1326_v8, %v1320_v5  ;;  %v1340_v29 = vand.u32 8388607, %v445_v9  ;;  %v1346_v33 = vshll.u32 %v349_v25, 8 }
  0xcc   :  { %v356_v20 = vsub.s32 32, %v355_v12  ;;  %v296_v30 = vsel %vm294_vm12, %v295_v15, %v1321_v6  ;;  %v189_v23 = vadd.s32 %v1294_v18, %v1291_v17  ;;  %v1355_v19 = vshrl.u32 %v353_v2, 5 }
  0xcd   :  { %v1343_v24 = vsub.s32 %v193_v54, %v196_v14  ;;  %v297_v35 = vadd.s32 %v296_v30, %v292_v27  ;;  %v1022_v42 = vadd.s32 4294967169, %v449_v22  ;;  %v219_v43 = vsub.s32 4, %v195_v10 }
  0xce   :  { %v359_v37 = vshrl.u32 %v1180_v32, %v356_v20  ;;  %v362_v40 = vshrl.u32 %v1181_v34, %v356_v20  ;;  %v365_v41 = vshrl.u32 %v1182_v36, %v356_v20  ;;  %v358_v62 = vshll.u32 %v1179_v28, %v355_v12 }
  0xcf   :  { %v199_v39 = vsub.s32 0, %v1343_v24  ;;  %v298_v44 = vadd.s32 536870912, %v297_v35  ;;  %v453_v46 = vor.u32 8388608, %v1340_v29  ;;  %v361_v18 = vshll.u32 %v1180_v32, %v355_v12 }
  0xd0   :  { %v364_v47 = vshll.u32 %v1181_v34, %v355_v12  ;;  %v368_v21 = vshrl.u32 %v1183_v38, %v356_v20  ;;  %v360_v53 = vor.u32 %v359_v37, %v358_v62  ;;  %v367_v31 = vshll.u32 %v1182_v36, %v355_v12 }
  0xd1   :  { %v1011_v17 = vmin.u32 %v199_v39, %v1343_v24  ;;  %v299_v52 = vshrl.u32 %v298_v44, 30  ;;  %v371_v54 = vshrl.u32 %v1184_v45, %v356_v20  ;;  %v363_v56 = vor.u32 %v362_v40, %v361_v18 }
  0xd2   :  { %v366_v60 = vor.u32 %v365_v41, %v364_v47  ;;  %v370_v61 = vshll.u32 %v1183_v38, %v355_v12  ;;  %v220_v63 = vsel %vm135_vm13, %v219_v43, %v195_v10  ;;  %v369_v2 = vor.u32 %v368_v21, %v367_v31 }
  0xd3   :  { %v201_v55 = vclz %v1011_v17  ;;  %v300_v1 = vshll.u32 %v299_v52, 30  ;;  %vm373_vm15 = vcmp.lt.s32.totalorder %v1355_v19, 1  ;;  %vm374_vm0 = vcmp.lt.s32.totalorder %v1355_v19, 2 }
  0xd4   :  { %v372_v4 = vor.u32 %v371_v54, %v370_v61  ;;  %vm376_vm1 = vcmp.lt.s32.totalorder %v1355_v19, 4  ;;  %vm239_vm2 = vcmp.lt.s32.totalorder %v1238_v58, 0  ;;  %v357_v7 = vshrl.u32 %v1179_v28, %v356_v20 }
  0xd5   :  { %v1012_v3 = vadd.s32 4294967294, %v201_v55  ;;  %v1376_v6 = vsub.s32 %v297_v35, %v300_v1  ;;  %vm375_vm3 = vcmp.lt.s32.totalorder %v1355_v19, 3  ;;  %v382_v10 = vsel %vm376_vm1, %v369_v2, 920167782 }
  0xd6   :  { %v222_v11 = vsel %vm1350_vm14, 0, %v220_v63  ;;  %v381_v25 = vsel %vm373_vm15, %v360_v53, %v363_v56  ;;  %v383_v12 = vsel %vm375_vm3, %v366_v60, %v382_v10  ;;  %v323_v22 = vsub.s32 4, %v299_v52 }
  0xd7   :  { %vm1013_vm4 = vcmp.lt.s32.totalorder %v1012_v3, 0  ;;  %v303_v15 = vsub.s32 0, %v1376_v6  ;;  %v385_v20 = vsel %vm373_vm15, %v363_v56, %v366_v60  ;;  %vm1393_vm5 = vcmp.le.f32.partialorder %v237_v0, 0.7853982 }
  0xd8   :  { %v204_v14 = vsel %vm1013_vm4, 0, %v1012_v3  ;;  %v378_v37 = vsel %vm376_vm1, %v366_v60, 2102212464  ;;  %v386_v39 = vsel %vm376_vm1, %v372_v4, 1326507024  ;;  %v384_v43 = vsel %vm374_vm0, %v381_v25, %v383_v12 }
  0xd9   :  { %v205_v27 = vsub.s32 32, %v204_v14  ;;  %v209_v30 = vsub.s32 4294967266, %v204_v14  ;;  %v206_v40 = vshll.u32 %v1343_v24, %v204_v14  ;;  %v1015_v41 = vmin.u32 %v303_v15, %v1376_v6 }
  0xda   :  { %v387_v44 = vsel %vm375_vm3, %v369_v2, %v386_v39  ;;  %v455_v18 = vadd.s32 1, %v1022_v42  ;;  %v226_v47 = vadd.s32 3, %v222_v11  ;;  %v377_v31 = vsel %vm373_vm15, %v357_v7, %v360_v53 }
  0xdb   :  { %v207_v0 = vshrl.u32 %v189_v23, %v205_v27  ;;  %v210_v62 = vadd.s32 127, %v209_v30  ;;  %v388_v17 = vsel %vm374_vm0, %v385_v20, %v387_v44  ;;  %v305_v21 = vclz %v1015_v41 }
  0xdc   :  { %v379_v24 = vsel %vm375_vm3, %v363_v56, %v378_v37  ;;  %v1414_v60 = vmul.u32.u64.low %v1346_v33, %v388_v17  ;;  %v1415_v61 = vmul.u32.u64.high %v1346_v33, %v388_v17, %v1414_v60  ;;  %vm456_vm6 = vcmp.gt.s32.totalorder %v455_v18, 0 }
  0xdd   :  { %v208_v54 = vor.u32 %v207_v0, %v206_v40  ;;  %v211_v55 = vshll.u32 %v210_v62, 23  ;;  %v1016_v23 = vadd.s32 4294967294, %v305_v21  ;;  %v293_v53 = vadd.s32 %v1320_v5, %v1326_v8 }
  0xde   :  { %v1418_v63 = vmul.u32.u64.low %v1346_v33, %v384_v43  ;;  %v1419_v1 = vmul.u32.u64.high %v1346_v33, %v384_v43, %v1418_v63  ;;  %v324_v56 = vsel %vm239_vm2, %v323_v22, %v299_v52  ;;  %v457_v2 = vsel %vm456_vm6, %v455_v18, 0 }
  0xdf   :  { %v212_v42 = vor.u32 4788187, %v211_v55  ;;  %v1426_v3 = vand.u32 3, %v226_v47  ;;  %vm1017_vm7 = vcmp.lt.s32.totalorder %v1016_v23, 0  ;;  %v380_v4 = vsel %vm374_vm0, %v377_v31, %v379_v24 }
  0xe0   :  { %v459_v7 = vand.u32 31, %v457_v2  ;;  %v215_v11 = vcvt.s32.f32 %v208_v54  ;;  %v308_v25 = vsel %vm1017_vm7, 0, %v1016_v23  ;;  %vm398_vm8 = vc.u32 %v1415_v61, %v1418_v63 }
  0xe1   :  { %v213_v10 = vand.u32 2147483647, %v212_v42  ;;  %v309_v12 = vsub.s32 32, %v308_v25  ;;  %v313_v14 = vsub.s32 4294967266, %v308_v25  ;;  %v326_v5 = vsel %vm1393_vm5, 0, %v324_v56 }
  0xe2   :  { %v399_v8 = vadd.s32 1, %v1419_v1  ;;  %v396_v15 = vmul.u32 %v1346_v33, %v380_v4  ;;  %v1436_v22 = vshrl.u32 %v457_v2, 5  ;;  %v460_v19 = vsub.s32 32, %v459_v7 }
  0xe3   :  { %v216_v52 = vmul.f32 %v215_v11, %v213_v10  ;;  %v310_v20 = vshll.u32 %v1376_v6, %v308_v25  ;;  %v311_v27 = vshrl.u32 %v293_v53, %v309_v12  ;;  %v314_v30 = vadd.s32 127, %v313_v14 }
  0xe4   :  { %v400_v37 = vsel %vm398_vm8, %v399_v8, %v1419_v1  ;;  %v462_v41 = vshll.u32 %v1179_v28, %v459_v7  ;;  %v463_v43 = vshrl.u32 %v1180_v32, %v460_v19  ;;  %v465_v62 = vshll.u32 %v1180_v32, %v459_v7 }
  0xe5   :  { %v217_v39 = vxor.u32 2147483648, %v216_v52  ;;  %v401_v40 = vadd.s32 %v400_v37, %v396_v15  ;;  %v312_v44 = vor.u32 %v311_v27, %v310_v20  ;;  %v315_v0 = vshll.u32 %v314_v30, 23 }
  0xe6   :  { %v466_v33 = vshrl.u32 %v1181_v34, %v460_v19  ;;  %v468_v18 = vshll.u32 %v1181_v34, %v459_v7  ;;  %v469_v47 = vshrl.u32 %v1182_v36, %v460_v19  ;;  %v464_v24 = vor.u32 %v463_v43, %v462_v41  ;;  %v1499_v43 = vpop.permute.xlu1 %118 }
  0xe7   :  { %v218_v17 = vsel %vm135_vm13, %v217_v39, %v216_v52  ;;  %v402_v6 = vadd.s32 536870912, %v401_v40  ;;  %v316_v31 = vor.u32 4788187, %v315_v0  ;;  %v471_v54 = vshll.u32 %v1182_v36, %v459_v7 }
  0xe8   :  { %v221_v21 = vsel %vm1350_vm14, %v1236_v57, %v218_v17  ;;  %v319_v55 = vcvt.s32.f32 %v312_v44  ;;  %v472_v23 = vshrl.u32 %v1183_v38, %v460_v19  ;;  %v467_v42 = vor.u32 %v466_v33, %v465_v62 }
  0xe9   :  { %1093 = vcosq.f32 %v221_v21  ;;  %v1452_v60 = vshrl.u32 %v402_v6, 30  ;;  %v317_v1 = vand.u32 2147483647, %v316_v31  ;;  %v475_v53 = vshrl.u32 %v1184_v45, %v460_v19 }
  0xea   :  { %1095 = vsinq.f32 %v221_v21  ;;  %v473_v2 = vor.u32 %v472_v23, %v471_v54  ;;  %v470_v4 = vor.u32 %v469_v47, %v468_v18  ;;  %v474_v10 = vshll.u32 %v1183_v38, %v459_v7 }
  0xeb   :  { %v404_v56 = vshll.u32 %v1452_v60, 30  ;;  %v320_v26 = vmul.f32 %v319_v55, %v317_v1  ;;  %v330_v11 = vadd.s32 3, %v326_v5  ;;  %vm477_vm9 = vcmp.lt.s32.totalorder %v1436_v22, 1 }
  0xec   :  { %v1463_v12 = vshll.u32 %v453_v46, 8  ;;  %vm229_vm10 = vcmp.eq.s32.totalorder %v1426_v3, 0  ;;  %v476_v8 = vor.u32 %v475_v53, %v474_v10  ;;  %vm480_vm11 = vcmp.lt.s32.totalorder %v1436_v22, 4 }
  0xed   :  { %v1458_v25 = vsub.s32 %v401_v40, %v404_v56  ;;  %v321_v14 = vxor.u32 2147483648, %v320_v26  ;;  %v485_v52 = vsel %vm477_vm9, %v464_v24, %v467_v42  ;;  %vm228_vm12 = vcmp.lt.s32.totalorder %v1426_v3, 2 }
  0xee   :  { %v461_v5 = vshrl.u32 %v1179_v28, %v460_v19  ;;  %vm479_vm13 = vcmp.lt.s32.totalorder %v1436_v22, 3  ;;  %v486_v29 = vsel %vm480_vm11, %v473_v2, 920167782  ;;  %vm225_vm14 = vweird.f32 %v1236_v57 }
  0xef   :  { %v407_v7 = vsub.s32 0, %v1458_v25  ;;  %v322_v46 = vsel %vm239_vm2, %v321_v14, %v320_v26  ;;  %vm343_vm15 = vcmp.lt.s32.totalorder %v1240_v59, 0  ;;  %vm478_vm0 = vcmp.lt.s32.totalorder %v1436_v22, 2 }
  0xf0   :  { %v482_v15 = vsel %vm480_vm11, %v470_v4, 2102212464  ;;  %v487_v19 = vsel %vm479_vm13, %v470_v4, %v486_v29  ;;  %v325_v20 = vsel %vm1393_vm5, %v1238_v58, %v322_v46  ;;  %v489_v37 = vsel %vm477_vm9, %v467_v42, %v470_v4 }
  0xf1   :  { %v1019_v27 = vmin.u32 %v407_v7, %v1458_v25  ;;  %v488_v30 = vsel %vm478_vm0, %v485_v52, %v487_v19  ;;  %1097 = vcosq.f32 %v325_v20  ;;  %v490_v39 = vsel %vm480_vm11, %v476_v8, 1326507024 }
  0xf2   :  { %v1495_v40 = vmul.u32.u64.low %v1463_v12, %v488_v30  ;;  %v1496_v41 = vmul.u32.u64.high %v1463_v12, %v488_v30, %v1495_v40  ;;  %vm232_vm1 = vcmp.eq.s32.totalorder %v1426_v3, 2  ;;  %1099 = vsinq.f32 %v325_v20 }
  0xf3   :  { %v1094_v35 = vpop.eup %1093  ;;  %vm1504_vm2 = vcmp.le.f32.partialorder %v341_v16, 0.7853982  ;;  %v409_v0 = vclz %v1019_v27  ;;  %v427_v62 = vsub.s32 4, %v1452_v60  ;;  %v481_v6 = vsel %vm477_vm9, %v461_v5, %v464_v24 }
  0xf4   :  { %v1096_v33 = vpop.eup %1095  ;;  %v233_v17 = vxor.u32 2147483648, %v1094_v35  ;;  %v483_v18 = vsel %vm479_vm13, %v467_v42, %v482_v15  ;;  %v491_v47 = vsel %vm479_vm13, %v473_v2, %v490_v39  ;;  %v1519_v54 = vadd.f32 %v1499_v43, %v1228_v48 }
  0xf5   :  { %v230_v21 = vxor.u32 2147483648, %v1096_v33  ;;  %v1020_v31 = vadd.s32 4294967294, %v409_v0  ;;  %v492_v16 = vsel %vm478_vm0, %v489_v37, %v491_v47  ;;  %v331_v23 = vand.u32 3, %v330_v11 }
  0xf6   :  { %v234_v55 = vsel %vm232_vm1, %v233_v17, %v1096_v33  ;;  %v1522_v1 = vmul.u32.u64.low %v1463_v12, %v492_v16  ;;  %v1523_v24 = vmul.u32.u64.high %v1463_v12, %v492_v16, %v1522_v1  ;;  %v484_v53 = vsel %vm478_vm0, %v481_v6, %v483_v18 }
  0xf7   :  { %v231_v42 = vsel %vm229_vm10, %v1094_v35, %v230_v21  ;;  %vm1021_vm3 = vcmp.lt.s32.totalorder %v1020_v31, 0  ;;  %v503_v56 = vadd.s32 1, %v1496_v41  ;;  %v397_v48 = vadd.s32 %v1418_v63, %v1415_v61 }
  0xf8   :  { %v235_v2 = vsel %vm228_vm12, %v231_v42, %v234_v55  ;;  %v412_v26 = vsel %vm1021_vm3, 0, %v1020_v31  ;;  %v552_v4 = vand.u32 2139095040, %v1519_v54  ;;  %vm329_vm4 = vweird.f32 %v1238_v58 }
  0xf9   :  { %v236_v10 = vsel %vm225_vm14, nan, %v235_v2  ;;  %v413_v11 = vsub.s32 32, %v412_v26  ;;  %v417_v14 = vsub.s32 4294967266, %v412_v26  ;;  %v428_v22 = vsel %vm343_vm15, %v427_v62, %v1452_v60 }
  0xfa   :  { %981 = vst [vmem:[#allocation5 + $0x40] sm:$0xff] %v236_v10  ;;  %v500_v3 = vmul.u32 %v1463_v12, %v484_v53  ;;  %vm502_vm5 = vc.u32 %v1523_v24, %v1495_v40  ;;  %v549_v61 = vand.u32 2147483647, %v1519_v54  ;;  %v553_v63 = vshrl.u32 %v552_v4, 23 }
  0xfb   :  { %v414_v57 = vshll.u32 %v1458_v25, %v412_v26  ;;  %v415_v8 = vshrl.u32 %v397_v48, %v413_v11  ;;  %v418_v52 = vadd.s32 127, %v417_v14  ;;  %v504_v7 = vsel %vm502_vm5, %v503_v56, %v1496_v41  ;;  %v1098_v5 = vpop.eup %1097 }
  0xfc   :  { %vm332_vm6 = vcmp.lt.s32.totalorder %v331_v23, 2  ;;  %v430_v60 = vsel %vm1504_vm2, 0, %v428_v22  ;;  %v505_v29 = vadd.s32 %v504_v7, %v500_v3  ;;  %v1026_v46 = vadd.s32 4294967169, %v553_v63  ;;  %v1100_v12 = vpop.eup %1099 }
  0xfd   :  { %vm336_vm7 = vcmp.eq.s32.totalorder %v331_v23, 2  ;;  %v337_v15 = vxor.u32 2147483648, %v1098_v5  ;;  %v416_v19 = vor.u32 %v415_v8, %v414_v57  ;;  %v419_v20 = vshll.u32 %v418_v52, 23 }
  0xfe   :  { %v334_v27 = vxor.u32 2147483648, %v1100_v12  ;;  %v506_v30 = vadd.s32 536870912, %v505_v29  ;;  %v556_v25 = vand.u32 8388607, %v549_v61  ;;  %v559_v37 = vadd.s32 1, %v1026_v46 }
  0xff   :  { %vm333_vm8 = vcmp.eq.s32.totalorder %v331_v23, 0  ;;  %v338_v39 = vsel %vm336_vm7, %v337_v15, %v1100_v12  ;;  %v420_v41 = vor.u32 4788187, %v419_v20  ;;  %v434_v35 = vadd.s32 3, %v430_v60 }
 0x100   :  { %v335_v0 = vsel %vm333_vm8, %v1098_v5, %v334_v27  ;;  %v507_v62 = vshrl.u32 %v506_v30, 30  ;;  %v1553_v33 = vadd.f32 %v1499_v43, %v1230_v49  ;;  %vm560_vm9 = vcmp.gt.s32.totalorder %v559_v37, 0 }
 0x101   :  { %v339_v17 = vsel %vm332_vm6, %v335_v0, %v338_v39  ;;  %v421_v6 = vand.u32 2147483647, %v420_v41  ;;  %v423_v18 = vcvt.s32.f32 %v416_v19  ;;  %v561_v47 = vsel %vm560_vm9, %v559_v37, 0 }
 0x102   :  { %v340_v21 = vsel %vm329_vm4, nan, %v339_v17  ;;  %v508_v31 = vshll.u32 %v507_v62, 30  ;;  %v557_v16 = vor.u32 8388608, %v556_v25  ;;  %v563_v1 = vand.u32 31, %v561_v47 }
 0x103   :  { %982 = vst [vmem:[#allocation5 + $0x48] sm:$0xff] %v340_v21  ;;  %v424_v55 = vmul.f32 %v423_v18, %v421_v6  ;;  %v1558_v42 = vand.u32 3, %v434_v35  ;;  %vm1562_vm10 = vcmp.le.f32.partialorder %v445_v9, 0.7853982  ;;  %vm447_vm11 = vcmp.lt.s32.totalorder %v1251_v13, 0 }
 0x104   :  { %v501_v43 = vadd.s32 %v1495_v40, %v1523_v24  ;;  %v1569_v58 = vsub.s32 %v505_v29, %v508_v31  ;;  %v531_v53 = vsub.s32 4, %v507_v62  ;;  %v564_v56 = vsub.s32 32, %v563_v1 }
 0x105   :  { %v425_v23 = vxor.u32 2147483648, %v424_v55  ;;  %v656_v2 = vand.u32 2139095040, %v1553_v33  ;;  %v1573_v26 = vshrl.u32 %v561_v47, 5  ;;  %v1575_v9 = vshll.u32 %v557_v16, 8 }
 0x106   :  { %v511_v48 = vsub.s32 0, %v1569_v58  ;;  %v653_v4 = vand.u32 2147483647, %v1553_v33  ;;  %v566_v40 = vshll.u32 %v1179_v28, %v563_v1  ;;  %v567_v24 = vshrl.u32 %v1180_v32, %v564_v56 }
 0x107   :  { %v426_v10 = vsel %vm343_vm15, %v425_v23, %v424_v55  ;;  %v570_v11 = vshrl.u32 %v1181_v34, %v564_v56  ;;  %v569_v3 = vshll.u32 %v1180_v32, %v563_v1  ;;  %v573_v63 = vshrl.u32 %v1182_v36, %v564_v56 }
 0x108   :  { %v429_v14 = vsel %vm1504_vm2, %v1240_v59, %v426_v10  ;;  %v1023_v22 = vmin.u32 %v511_v48, %v1569_v58  ;;  %v1591_v57 = vsel %vm447_vm11, %v531_v53, %v507_v62  ;;  %v572_v8 = vshll.u32 %v1181_v34, %v563_v1 }
 0x109   :  { %1101 = vcosq.f32 %v429_v14  ;;  %v657_v52 = vshrl.u32 %v656_v2, 23  ;;  %v568_v5 = vor.u32 %v567_v24, %v566_v40  ;;  %v571_v60 = vor.u32 %v570_v11, %v569_v3 }
 0x10a   :  { %1103 = vsinq.f32 %v429_v14  ;;  %v513_v7 = vclz %v1023_v22  ;;  %v574_v44 = vor.u32 %v573_v63, %v572_v8  ;;  %v575_v29 = vshll.u32 %v1182_v36, %v563_v1 }
 0x10b   :  { %v576_v46 = vshrl.u32 %v1183_v38, %v564_v56  ;;  %vm581_vm12 = vcmp.lt.s32.totalorder %v1573_v26, 1  ;;  %v578_v15 = vshll.u32 %v1183_v38, %v563_v1  ;;  %v579_v19 = vshrl.u32 %v1184_v45, %v564_v56 }
 0x10c   :  { %v1024_v12 = vadd.s32 4294967294, %v513_v7  ;;  %vm582_vm13 = vcmp.lt.s32.totalorder %v1573_v26, 2  ;;  %vm440_vm14 = vcmp.eq.s32.totalorder %v1558_v42, 2  ;;  %v534_v20 = vsel %vm1562_vm10, 0, %v1591_v57 }
 0x10d   :  { %v565_v27 = vshrl.u32 %v1179_v28, %v564_v56  ;;  %v577_v30 = vor.u32 %v576_v46, %v575_v29  ;;  %vm583_vm15 = vcmp.lt.s32.totalorder %v1573_v26, 3  ;;  %v580_v25 = vor.u32 %v579_v19, %v578_v15  ;;  %v965_v19 = vld [vmem:[#allocation2] sm:$0xff] }
 0x10e   :  { %vm1025_vm0 = vcmp.lt.s32.totalorder %v1024_v12, 0  ;;  %vm584_vm1 = vcmp.lt.s32.totalorder %v1573_v26, 4  ;;  %v589_v37 = vsel %vm581_vm12, %v568_v5, %v571_v60  ;;  %vm436_vm2 = vcmp.lt.s32.totalorder %v1558_v42, 2  ;;  %973 = vst [vmem:[#allocation5] sm:$0xff] %v965_v19 }
 0x10f   :  { %v516_v39 = vsel %vm1025_vm0, 0, %v1024_v12  ;;  %v586_v41 = vsel %vm584_vm1, %v574_v44, 2102212464  ;;  %v590_v35 = vsel %vm584_vm1, %v577_v30, 920167782  ;;  %v1030_v0 = vadd.s32 4294967169, %v657_v52 }
 0x110   :  { %vm433_vm3 = vweird.f32 %v1240_v59  ;;  %v517_v62 = vsub.s32 32, %v516_v39  ;;  %v521_v17 = vsub.s32 4294967266, %v516_v39  ;;  %v591_v6 = vsel %vm583_vm15, %v574_v44, %v590_v35 }
 0x111   :  { %v593_v18 = vsel %vm581_vm12, %v571_v60, %v574_v44  ;;  %v518_v47 = vshll.u32 %v1569_v58, %v516_v39  ;;  %v585_v21 = vsel %vm581_vm12, %v565_v27, %v568_v5  ;;  %v592_v31 = vsel %vm582_vm13, %v589_v37, %v591_v6  ;;  %v966_v27 = vld [vmem:[#allocation2 + $0x8] sm:$0xff]  ;;  %v967_v37 = vld [vmem:[#allocation2 + $0x10] sm:$0xff]  ;;  %v968_v39 = vld [vmem:[#allocation2 + $0x18] sm:$0xff] }
 0x112   :  { %v594_v16 = vsel %vm584_vm1, %v580_v25, 1326507024  ;;  %v519_v55 = vshrl.u32 %v501_v43, %v517_v62  ;;  %v522_v1 = vadd.s32 127, %v521_v17  ;;  %v663_v53 = vadd.s32 1, %v1030_v0  ;;  %974 = vst [vmem:[#allocation5 + $0x8] sm:$0xff] %v966_v27  ;;  %v970_v0 = vld [vmem:[#allocation2 + $0x28] sm:$0xff] }
 0x113   :  { %v595_v23 = vsel %vm583_vm15, %v577_v30, %v594_v16  ;;  %v1102_v56 = vpop.eup %1101  ;;  %v587_v2 = vsel %vm583_vm15, %v571_v60, %v586_v41  ;;  %v1627_v48 = vmul.u32.u64.low %v1575_v9, %v592_v31  ;;  %v1628_v10 = vmul.u32.u64.high %v1575_v9, %v592_v31, %v1627_v48  ;;  %v969_v41 = vld [vmem:[#allocation2 + $0x20] sm:$0xff]  ;;  %v971_v62 = vld [vmem:[#allocation2 + $0x30] sm:$0xff]  ;;  %975 = vst [vmem:[#allocation5 + $0x10] sm:$0xff] %v967_v37  ;;  %976 = vst [vmem:[#allocation5 + $0x18] sm:$0xff] %v968_v39 }
 0x114   :  { %v596_v58 = vsel %vm582_vm13, %v593_v18, %v595_v23  ;;  %v1104_v40 = vpop.eup %1103  ;;  %v441_v24 = vxor.u32 2147483648, %v1102_v56  ;;  %v520_v43 = vor.u32 %v519_v55, %v518_v47  ;;  %v523_v11 = vshll.u32 %v522_v1, 23  ;;  %977 = vst [vmem:[#allocation5 + $0x20] sm:$0xff] %v969_v41  ;;  %978 = vst [vmem:[#allocation5 + $0x28] sm:$0xff] %v970_v0 }
 0x115   :  { %vm664_vm4 = vcmp.gt.s32.totalorder %v663_v53, 0  ;;  %v438_v14 = vxor.u32 2147483648, %v1104_v40  ;;  %v1632_v22 = vmul.u32.u64.low %v1575_v9, %v596_v58  ;;  %v1633_v3 = vmul.u32.u64.high %v1575_v9, %v596_v58, %v1632_v22  ;;  %979 = vst [vmem:[#allocation5 + $0x30] sm:$0xff] %v971_v62 }
 0x116   :  { %v665_v63 = vsel %vm664_vm4, %v663_v53, 0  ;;  %vm437_vm5 = vcmp.eq.s32.totalorder %v1558_v42, 0  ;;  %v442_v57 = vsel %vm440_vm14, %v441_v24, %v1104_v40  ;;  %v524_v8 = vor.u32 4788187, %v523_v11 }
 0x117   :  { %v588_v52 = vsel %vm582_vm13, %v585_v21, %v587_v2  ;;  %v439_v7 = vsel %vm437_vm5, %v1102_v56, %v438_v14  ;;  %v607_v5 = vadd.s32 1, %v1628_v10  ;;  %v1643_v60 = vand.u32 8388607, %v653_v4 }
 0x118   :  { %v667_v44 = vand.u32 31, %v665_v63  ;;  %v443_v29 = vsel %vm436_vm2, %v439_v7, %v442_v57  ;;  %v525_v46 = vand.u32 2147483647, %v524_v8  ;;  %v527_v12 = vcvt.s32.f32 %v520_v43 }
 0x119   :  { %v538_v15 = vadd.s32 3, %v534_v20  ;;  %v444_v26 = vsel %vm433_vm3, nan, %v443_v29  ;;  %v604_v30 = vmul.u32 %v1575_v9, %v588_v52  ;;  %vm606_vm6 = vc.u32 %v1633_v3, %v1627_v48  ;;  %v972_v9 = vld [vmem:[#allocation2 + $0x38] sm:$0xff] }
 0x11a   :  { %v668_v25 = vsub.s32 32, %v667_v44  ;;  %v528_v42 = vmul.f32 %v527_v12, %v525_v46  ;;  %983 = vst [vmem:[#allocation5 + $0x50] sm:$0xff] %v444_v26  ;;  %v608_v20 = vsel %vm606_vm6, %v607_v5, %v1628_v10  ;;  %v1653_v35 = vshrl.u32 %v665_v63, 5  ;;  %980 = vst [vmem:[#allocation5 + $0x38] sm:$0xff] %v972_v9  ;;  %v1680_v5 = vpop.permute.xlu1 %122 }
 0x11b   :  { %v670_v59 = vshll.u32 %v1179_v28, %v667_v44  ;;  %v609_v17 = vadd.s32 %v608_v20, %v604_v30  ;;  %v673_v18 = vshll.u32 %v1180_v32, %v667_v44  ;;  %v676_v31 = vshll.u32 %v1181_v34, %v667_v44 }
 0x11c   :  { %v671_v6 = vshrl.u32 %v1180_v32, %v668_v25  ;;  %v674_v47 = vshrl.u32 %v1181_v34, %v668_v25  ;;  %v529_v21 = vxor.u32 2147483648, %v528_v42  ;;  %v677_v16 = vshrl.u32 %v1182_v36, %v668_v25 }
 0x11d   :  { %v679_v55 = vshll.u32 %v1182_v36, %v667_v44  ;;  %v610_v1 = vadd.s32 536870912, %v609_v17  ;;  %v680_v56 = vshrl.u32 %v1183_v38, %v668_v25  ;;  %v682_v10 = vshll.u32 %v1183_v38, %v667_v44 }
 0x11e   :  { %v672_v23 = vor.u32 %v671_v6, %v670_v59  ;;  %v675_v53 = vor.u32 %v674_v47, %v673_v18  ;;  %v530_v2 = vsel %vm447_vm11, %v529_v21, %v528_v42  ;;  %v678_v58 = vor.u32 %v677_v16, %v676_v31 }
 0x11f   :  { %v683_v40 = vshrl.u32 %v1184_v45, %v668_v25  ;;  %v533_v24 = vsel %vm1562_vm10, %v1251_v13, %v530_v2  ;;  %v1670_v43 = vand.u32 3, %v538_v15  ;;  %v1672_v11 = vshrl.u32 %v610_v1, 30 }
 0x120   :  { %v681_v14 = vor.u32 %v680_v56, %v679_v55  ;;  %1105 = vcosq.f32 %v533_v24  ;;  %v661_v22 = vor.u32 8388608, %v1643_v60  ;;  %vm685_vm7 = vcmp.lt.s32.totalorder %v1653_v35, 1 }
 0x121   :  { %v684_v63 = vor.u32 %v683_v40, %v682_v10  ;;  %1107 = vsinq.f32 %v533_v24  ;;  %v612_v57 = vshll.u32 %v1672_v11, 30  ;;  %v669_v8 = vshrl.u32 %v1179_v28, %v668_v25 }
 0x122   :  { %vm688_vm8 = vcmp.lt.s32.totalorder %v1653_v35, 4  ;;  %vm687_vm9 = vcmp.lt.s32.totalorder %v1653_v35, 3  ;;  %v693_v52 = vsel %vm685_vm7, %v672_v23, %v675_v53  ;;  %vm686_vm10 = vcmp.lt.s32.totalorder %v1653_v35, 2 }
 0x123   :  { %v690_v49 = vsel %vm688_vm8, %v678_v58, 2102212464  ;;  %v694_v7 = vsel %vm688_vm8, %v681_v14, 920167782  ;;  %v1682_v44 = vsub.s32 %v609_v17, %v612_v57  ;;  %v697_v29 = vsel %vm685_vm7, %v675_v53, %v678_v58 }
 0x124   :  { %v695_v60 = vsel %vm687_vm9, %v678_v58, %v694_v7  ;;  %v689_v46 = vsel %vm685_vm7, %v669_v8, %v672_v23  ;;  %v698_v15 = vsel %vm688_vm8, %v684_v63, 1326507024  ;;  %v701_v19 = vshll.u32 %v661_v22, 8 }
 0x125   :  { %v696_v12 = vsel %vm686_vm10, %v693_v52, %v695_v60  ;;  %v615_v27 = vsub.s32 0, %v1682_v44  ;;  %v691_v26 = vsel %vm687_vm9, %v675_v53, %v690_v49  ;;  %v699_v30 = vsel %vm687_vm9, %v681_v14, %v698_v15 }
 0x126   :  { %v1690_v25 = vadd.f32 %v1680_v5, %v1232_v50  ;;  %v700_v37 = vsel %vm686_vm10, %v697_v29, %v699_v30  ;;  %v1694_v39 = vmul.u32.u64.low %v701_v19, %v696_v12  ;;  %v1695_v41 = vmul.u32.u64.high %v701_v19, %v696_v12, %v1694_v39 }
 0x127   :  { %v1027_v42 = vmin.u32 %v615_v27, %v1682_v44  ;;  %v1698_v20 = vmul.u32.u64.low %v701_v19, %v700_v37  ;;  %v1699_v59 = vmul.u32.u64.high %v701_v19, %v700_v37, %v1698_v20  ;;  %vm537_vm11 = vweird.f32 %v1251_v13 }
 0x128   :  { %v692_v0 = vsel %vm686_vm10, %v689_v46, %v691_v26  ;;  %v760_v62 = vand.u32 2139095040, %v1690_v25  ;;  %vm540_vm12 = vcmp.lt.s32.totalorder %v1670_v43, 2  ;;  %vm541_vm13 = vcmp.eq.s32.totalorder %v1670_v43, 0 }
 0x129   :  { %vm551_vm14 = vcmp.lt.s32.totalorder %v1519_v54, 0  ;;  %v617_v50 = vclz %v1027_v42  ;;  %v635_v17 = vsub.s32 4, %v1672_v11  ;;  %v711_v6 = vadd.s32 1, %v1695_v41 }
 0x12a   :  { %v1106_v9 = vpop.eup %1105  ;;  %v757_v18 = vand.u32 2147483647, %v1690_v25  ;;  %v761_v47 = vshrl.u32 %v760_v62, 23  ;;  %v708_v16 = vmul.u32 %v701_v19, %v692_v0  ;;  %vm710_vm15 = vc.u32 %v1699_v59, %v1694_v39 }
 0x12b   :  { %v1108_v21 = vpop.eup %1107  ;;  %v545_v35 = vxor.u32 2147483648, %v1106_v9  ;;  %v1028_v31 = vadd.s32 4294967294, %v617_v50  ;;  %vm544_vm0 = vcmp.eq.s32.totalorder %v1670_v43, 2  ;;  %v712_v1 = vsel %vm710_vm15, %v711_v6, %v1695_v41 }
 0x12c   :  { %v542_v55 = vxor.u32 2147483648, %v1108_v21  ;;  %v1034_v23 = vadd.s32 4294967169, %v761_v47  ;;  %v605_v56 = vadd.s32 %v1627_v48, %v1633_v3  ;;  %v713_v2 = vadd.s32 %v712_v1, %v708_v16 }
 0x12d   :  { %v546_v53 = vsel %vm544_vm0, %v545_v35, %v1108_v21  ;;  %vm1029_vm1 = vcmp.lt.s32.totalorder %v1028_v31, 0  ;;  %v764_v40 = vand.u32 8388607, %v757_v18  ;;  %v636_v57 = vsel %vm551_vm14, %v635_v17, %v1672_v11 }
 0x12e   :  { %v543_v58 = vsel %vm541_vm13, %v1106_v9, %v542_v55  ;;  %v620_v10 = vsel %vm1029_vm1, 0, %v1028_v31  ;;  %v767_v24 = vadd.s32 1, %v1034_v23  ;;  %vm1729_vm2 = vcmp.le.f32.partialorder %v549_v61, 0.7853982 }
 0x12f   :  { %v547_v14 = vsel %vm540_vm12, %v543_v58, %v546_v53  ;;  %v621_v22 = vsub.s32 32, %v620_v10  ;;  %v625_v63 = vsub.s32 4294967266, %v620_v10  ;;  %v714_v8 = vadd.s32 536870912, %v713_v2 }
 0x130   :  { %v548_v48 = vsel %vm537_vm11, nan, %v547_v14  ;;  %vm768_vm3 = vcmp.gt.s32.totalorder %v767_v24, 0  ;;  %v622_v43 = vshll.u32 %v1682_v44, %v620_v10  ;;  %v638_v11 = vsel %vm1729_vm2, 0, %v636_v57 }
 0x131   :  { %984 = vst [vmem:[#allocation5 + $0x58] sm:$0xff] %v548_v48  ;;  %v623_v49 = vshrl.u32 %v605_v56, %v621_v22  ;;  %v626_v52 = vadd.s32 127, %v625_v63  ;;  %v769_v7 = vsel %vm768_vm3, %v767_v24, 0  ;;  %v1736_v60 = vshrl.u32 %v714_v8, 30 }
 0x132   :  { %v765_v13 = vor.u32 8388608, %v764_v40  ;;  %v771_v29 = vand.u32 31, %v769_v7  ;;  %v642_v27 = vadd.s32 3, %v638_v11  ;;  %v1741_v44 = vadd.f32 %v1680_v5, %v1234_v51 }
 0x133   :  { %v624_v46 = vor.u32 %v623_v49, %v622_v43  ;;  %v627_v61 = vshll.u32 %v626_v52, 23  ;;  %v716_v12 = vshll.u32 %v1736_v60, 30  ;;  %v709_v26 = vadd.s32 %v1694_v39, %v1699_v59 }
 0x134   :  { %v772_v15 = vsub.s32 32, %v771_v29  ;;  %v1747_v41 = vshll.u32 %v765_v13, 8  ;;  %v770_v9 = vshrl.u32 %v769_v7, 5  ;;  %v774_v51 = vshll.u32 %v1179_v28, %v771_v29 }
 0x135   :  { %v628_v19 = vor.u32 4788187, %v627_v61  ;;  %v1744_v30 = vsub.s32 %v713_v2, %v716_v12  ;;  %v631_v20 = vcvt.s32.f32 %v624_v46  ;;  %v777_v5 = vshll.u32 %v1180_v32, %v771_v29 }
 0x136   :  { %v775_v37 = vshrl.u32 %v1180_v32, %v772_v15  ;;  %v778_v0 = vshrl.u32 %v1181_v34, %v772_v15  ;;  %v781_v62 = vshrl.u32 %v1182_v36, %v772_v15  ;;  %v780_v59 = vshll.u32 %v1181_v34, %v771_v29 }
 0x137   :  { %v629_v42 = vand.u32 2147483647, %v628_v19  ;;  %v719_v50 = vsub.s32 0, %v1744_v30  ;;  %v783_v17 = vshll.u32 %v1182_v36, %v771_v29  ;;  %v784_v6 = vshrl.u32 %v1183_v38, %v772_v15 }
 0x138   :  { %v776_v21 = vor.u32 %v775_v37, %v774_v51  ;;  %v779_v35 = vor.u32 %v778_v0, %v777_v5  ;;  %v787_v31 = vshrl.u32 %v1184_v45, %v772_v15  ;;  %v782_v55 = vor.u32 %v781_v62, %v780_v59 }
 0x139   :  { %v632_v39 = vmul.f32 %v631_v20, %v629_v42  ;;  %v1031_v47 = vmin.u32 %v719_v50, %v1744_v30  ;;  %v785_v1 = vor.u32 %v784_v6, %v783_v17  ;;  %v786_v23 = vshll.u32 %v1183_v38, %v771_v29 }
 0x13a   :  { %vm655_vm4 = vcmp.lt.s32.totalorder %v1553_v33, 0  ;;  %v739_v56 = vsub.s32 4, %v1736_v60  ;;  %v773_v2 = vshrl.u32 %v1179_v28, %v772_v15  ;;  %v864_v58 = vand.u32 2139095040, %v1741_v44 }
 0x13b   :  { %v633_v16 = vxor.u32 2147483648, %v632_v39  ;;  %v721_v53 = vclz %v1031_v47  ;;  %v788_v40 = vor.u32 %v787_v31, %v786_v23  ;;  %vm789_vm5 = vcmp.lt.s32.totalorder %v770_v9, 1 }
 0x13c   :  { %vm790_vm6 = vcmp.lt.s32.totalorder %v770_v9, 2  ;;  %vm791_vm7 = vcmp.lt.s32.totalorder %v770_v9, 3  ;;  %vm792_vm8 = vcmp.lt.s32.totalorder %v770_v9, 4  ;;  %v797_v63 = vsel %vm789_vm5, %v776_v21, %v779_v35 }
 0x13d   :  { %v634_v10 = vsel %vm551_vm14, %v633_v16, %v632_v39  ;;  %v1032_v14 = vadd.s32 4294967294, %v721_v53  ;;  %v794_v22 = vsel %vm792_vm8, %v782_v55, 2102212464  ;;  %v798_v57 = vsel %vm792_vm8, %v785_v1, 920167782 }
 0x13e   :  { %v637_v24 = vsel %vm1729_vm2, %v1519_v54, %v634_v10  ;;  %v793_v48 = vsel %vm789_vm5, %v773_v2, %v776_v21  ;;  %v799_v8 = vsel %vm791_vm7, %v782_v55, %v798_v57  ;;  %v801_v3 = vsel %vm789_vm5, %v779_v35, %v782_v55 }
 0x13f   :  { %1109 = vcosq.f32 %v637_v24  ;;  %vm1033_vm9 = vcmp.lt.s32.totalorder %v1032_v14, 0  ;;  %v800_v49 = vsel %vm790_vm6, %v797_v63, %v799_v8  ;;  %v802_v52 = vsel %vm792_vm8, %v788_v40, 1326507024 }
 0x140   :  { %1111 = vsinq.f32 %v637_v24  ;;  %v724_v43 = vsel %vm1033_vm9, 0, %v1032_v14  ;;  %v795_v13 = vsel %vm791_vm7, %v779_v35, %v794_v22  ;;  %v803_v29 = vsel %vm791_vm7, %v785_v1, %v802_v52 }
 0x141   :  { %v725_v7 = vsub.s32 32, %v724_v43  ;;  %v729_v11 = vsub.s32 4294967266, %v724_v43  ;;  %v726_v46 = vshll.u32 %v1744_v30, %v724_v43  ;;  %v804_v61 = vsel %vm790_vm6, %v801_v3, %v803_v29 }
 0x142   :  { %v1779_v12 = vmul.u32.u64.low %v1747_v41, %v800_v49  ;;  %v1780_v15 = vmul.u32.u64.high %v1747_v41, %v800_v49, %v1779_v12  ;;  %v1784_v42 = vmul.u32.u64.low %v1747_v41, %v804_v61  ;;  %v1785_v20 = vmul.u32.u64.high %v1747_v41, %v804_v61, %v1784_v42 }
 0x143   :  { %v727_v19 = vshrl.u32 %v709_v26, %v725_v7  ;;  %v730_v37 = vadd.s32 127, %v729_v11  ;;  %v643_v0 = vand.u32 3, %v642_v27  ;;  %v740_v62 = vsel %vm655_vm4, %v739_v56, %v1736_v60 }
 0x144   :  { %v796_v30 = vsel %vm790_vm6, %v793_v48, %v795_v13  ;;  %v865_v50 = vshrl.u32 %v864_v58, 23  ;;  %vm1793_vm10 = vcmp.le.f32.partialorder %v653_v4, 0.7853982  ;;  %v815_v26 = vadd.s32 1, %v1780_v15 }
 0x145   :  { %v728_v51 = vor.u32 %v727_v19, %v726_v46  ;;  %v731_v5 = vshll.u32 %v730_v37, 23  ;;  %v861_v59 = vand.u32 2147483647, %v1741_v44  ;;  %v742_v60 = vsel %vm1793_vm10, 0, %v740_v62 }
 0x146   :  { %v1038_v27 = vadd.s32 4294967169, %v865_v50  ;;  %v812_v9 = vmul.u32 %v1747_v41, %v796_v30  ;;  %vm814_vm11 = vc.u32 %v1785_v20, %v1779_v12  ;;  %vm645_vm12 = vcmp.eq.s32.totalorder %v643_v0, 0 }
 0x147   :  { %v732_v17 = vor.u32 4788187, %v731_v5  ;;  %vm648_vm13 = vcmp.eq.s32.totalorder %v643_v0, 2  ;;  %v816_v4 = vsel %vm814_vm11, %v815_v26, %v1780_v15  ;;  %v735_v16 = vcvt.s32.f32 %v728_v51 }
 0x148   :  { %v871_v47 = vadd.s32 1, %v1038_v27  ;;  %v817_v55 = vadd.s32 %v816_v4, %v812_v9  ;;  %v746_v23 = vadd.s32 3, %v742_v60  ;;  %v868_v53 = vand.u32 8388607, %v861_v59 }
 0x149   :  { %v1110_v6 = vpop.eup %1109  ;;  %v733_v31 = vand.u32 2147483647, %v732_v17  ;;  %vm644_vm15 = vcmp.lt.s32.totalorder %v643_v0, 2  ;;  %vm641_vm0 = vweird.f32 %v1519_v54  ;;  %v813_v51 = vadd.s32 %v1779_v12, %v1785_v20 }
 0x14a   :  { %v1112_v21 = vpop.eup %1111  ;;  %v649_v35 = vxor.u32 2147483648, %v1110_v6  ;;  %vm872_vm14 = vcmp.gt.s32.totalorder %v871_v47, 0  ;;  %v818_v2 = vadd.s32 536870912, %v817_v55  ;;  %v1811_v57 = vand.u32 3, %v746_v23 }
 0x14b   :  { %v646_v1 = vxor.u32 2147483648, %v1112_v21  ;;  %v736_v56 = vmul.f32 %v735_v16, %v733_v31  ;;  %v873_v58 = vsel %vm872_vm14, %v871_v47, 0  ;;  %v869_v49 = vor.u32 8388608, %v868_v53 }
 0x14c   :  { %v650_v41 = vsel %vm648_vm13, %v649_v35, %v1112_v21  ;;  %v875_v40 = vand.u32 31, %v873_v58  ;;  %v1809_v22 = vshrl.u32 %v818_v2, 30  ;;  %v874_v61 = vshrl.u32 %v873_v58, 5 }
 0x14d   :  { %v647_v10 = vsel %vm645_vm12, %v1110_v6, %v646_v1  ;;  %v737_v14 = vxor.u32 2147483648, %v736_v56  ;;  %vm752_vm1 = vcmp.eq.s32.totalorder %v1811_v57, 2  ;;  %v909_v50 = vshll.u32 %v869_v49, 8 }
 0x14e   :  { %v651_v24 = vsel %vm644_vm15, %v647_v10, %v650_v41  ;;  %v876_v48 = vsub.s32 32, %v875_v40  ;;  %v820_v43 = vshll.u32 %v1809_v22, 30  ;;  %v878_v3 = vshll.u32 %v1179_v28, %v875_v40 }
 0x14f   :  { %v652_v63 = vsel %vm641_vm0, nan, %v651_v24  ;;  %v738_v8 = vsel %vm655_vm4, %v737_v14, %v736_v56  ;;  %v881_v7 = vshll.u32 %v1180_v32, %v875_v40  ;;  %v884_v29 = vshll.u32 %v1181_v34, %v875_v40 }
 0x150   :  { %985 = vst [vmem:[#allocation5 + $0x60] sm:$0xff] %v652_v63  ;;  %v741_v54 = vsel %vm1793_vm10, %v1553_v33, %v738_v8  ;;  %v879_v52 = vshrl.u32 %v1180_v32, %v876_v48  ;;  %v882_v11 = vshrl.u32 %v1181_v34, %v876_v48  ;;  %v1823_v13 = vsub.s32 %v817_v55, %v820_v43 }
 0x151   :  { %1113 = vcosq.f32 %v741_v54  ;;  %v885_v46 = vshrl.u32 %v1182_v36, %v876_v48  ;;  %v887_v0 = vshll.u32 %v1182_v36, %v875_v40  ;;  %v888_v32 = vshrl.u32 %v1183_v38, %v876_v48 }
 0x152   :  { %1115 = vsinq.f32 %v741_v54  ;;  %v823_v15 = vsub.s32 0, %v1823_v13  ;;  %v880_v19 = vor.u32 %v879_v52, %v878_v3  ;;  %v883_v37 = vor.u32 %v882_v11, %v881_v7 }
 0x153   :  { %v886_v42 = vor.u32 %v885_v46, %v884_v29  ;;  %v890_v62 = vshll.u32 %v1183_v38, %v875_v40  ;;  %v891_v30 = vshrl.u32 %v1184_v45, %v876_v48  ;;  %v877_v5 = vshrl.u32 %v1179_v28, %v876_v48 }
 0x154   :  { %v1035_v34 = vmin.u32 %v823_v15, %v1823_v13  ;;  %v889_v39 = vor.u32 %v888_v32, %v887_v0  ;;  %vm893_vm2 = vcmp.lt.s32.totalorder %v874_v61, 1  ;;  %vm895_vm3 = vcmp.lt.s32.totalorder %v874_v61, 3 }
 0x155   :  { %v892_v26 = vor.u32 %v891_v30, %v890_v62  ;;  %vm896_vm4 = vcmp.lt.s32.totalorder %v874_v61, 4  ;;  %v901_v38 = vsel %vm893_vm2, %v880_v19, %v883_v37  ;;  %v905_v45 = vsel %vm893_vm2, %v883_v37, %v886_v42 }
 0x156   :  { %v825_v27 = vclz %v1035_v34  ;;  %v898_v36 = vsel %vm896_vm4, %v886_v42, 2102212464  ;;  %v902_v17 = vsel %vm896_vm4, %v889_v39, 920167782  ;;  %vm894_vm5 = vcmp.lt.s32.totalorder %v874_v61, 2 }
 0x157   :  { %v903_v9 = vsel %vm895_vm3, %v886_v42, %v902_v17  ;;  %v906_v6 = vsel %vm896_vm4, %v892_v26, 1326507024  ;;  %v897_v4 = vsel %vm893_vm2, %v877_v5, %v880_v19  ;;  %v899_v47 = vsel %vm895_vm3, %v883_v37, %v898_v36 }
 0x158   :  { %v1036_v60 = vadd.s32 4294967294, %v825_v27  ;;  %v904_v12 = vsel %vm894_vm5, %v901_v38, %v903_v9  ;;  %v907_v20 = vsel %vm895_vm3, %v889_v39, %v906_v6  ;;  %v900_v58 = vsel %vm894_vm5, %v897_v4, %v899_v47 }
 0x159   :  { %v908_v21 = vsel %vm894_vm5, %v905_v45, %v907_v20  ;;  %v1839_v35 = vmul.u32.u64.low %v909_v50, %v904_v12  ;;  %v1840_v31 = vmul.u32.u64.high %v909_v50, %v904_v12, %v1839_v35  ;;  %vm748_vm7 = vcmp.lt.s32.totalorder %v1811_v57, 2 }
 0x15a   :  { %vm1037_vm6 = vcmp.lt.s32.totalorder %v1036_v60, 0  ;;  %v1842_v23 = vmul.u32.u64.low %v909_v50, %v908_v21  ;;  %v1843_v53 = vmul.u32.u64.high %v909_v50, %v908_v21, %v1842_v23  ;;  %vm749_vm8 = vcmp.eq.s32.totalorder %v1811_v57, 0 }
 0x15b   :  { %v1114_v28 = vpop.eup %1113  ;;  %v828_v1 = vsel %vm1037_vm6, 0, %v1036_v60  ;;  %v919_v48 = vadd.s32 1, %v1840_v31  ;;  %vm745_vm9 = vweird.f32 %v1553_v33  ;;  %v916_v43 = vmul.u32 %v909_v50, %v900_v58 }
 0x15c   :  { %v1116_v16 = vpop.eup %1115  ;;  %v753_v55 = vxor.u32 2147483648, %v1114_v28  ;;  %v829_v56 = vsub.s32 32, %v828_v1  ;;  %v833_v2 = vsub.s32 4294967266, %v828_v1  ;;  %v830_v40 = vshll.u32 %v1823_v13, %v828_v1 }
 0x15d   :  { %v750_v41 = vxor.u32 2147483648, %v1116_v16  ;;  %vm918_vm10 = vc.u32 %v1843_v53, %v1839_v35  ;;  %v843_v15 = vsub.s32 4, %v1809_v22  ;;  %vm759_vm11 = vcmp.lt.s32.totalorder %v1690_v25, 0 }
 0x15e   :  { %v754_v10 = vsel %vm752_vm1, %v753_v55, %v1116_v16  ;;  %v831_v14 = vshrl.u32 %v813_v51, %v829_v56  ;;  %v834_v63 = vadd.s32 127, %v833_v2  ;;  %v920_v52 = vsel %vm918_vm10, %v919_v48, %v1840_v31 }
 0x15f   :  { %v751_v24 = vsel %vm749_vm8, %v1114_v28, %v750_v41  ;;  %v921_v57 = vadd.s32 %v920_v52, %v916_v43  ;;  %vm758_vm12 = vcmp.le.f32.partialorder %v757_v18, 0.7853982  ;;  %v844_v0 = vsel %vm759_vm11, %v843_v15, %v1809_v22 }
 0x160   :  { %v755_v8 = vsel %vm748_vm7, %v751_v24, %v754_v10  ;;  %v832_v3 = vor.u32 %v831_v14, %v830_v40  ;;  %v835_v54 = vshll.u32 %v834_v63, 23  ;;  %v846_v30 = vsel %vm758_vm12, 0, %v844_v0 }
 0x161   :  { %v756_v49 = vsel %vm745_vm9, nan, %v755_v8  ;;  %v922_v11 = vadd.s32 536870912, %v921_v57  ;;  %v850_v51 = vadd.s32 3, %v846_v30  ;;  %v917_v27 = vadd.s32 %v1839_v35, %v1843_v53 }
 0x162   :  { %986 = vst [vmem:[#allocation5 + $0x68] sm:$0xff] %v756_v49  ;;  %v836_v7 = vor.u32 4788187, %v835_v54  ;;  %v839_v29 = vcvt.s32.f32 %v832_v3  ;;  %vm849_vm1 = vweird.f32 %v1690_v25  ;;  %vm863_vm2 = vcmp.lt.s32.totalorder %v1741_v44, 0 }
 0x163   :  { %v923_v46 = vshrl.u32 %v922_v11, 30  ;;  %v851_v39 = vand.u32 3, %v850_v51  ;;  %vm862_vm3 = vcmp.le.f32.partialorder %v861_v59, 0.7853982  ;;  %vm953_vm7 = vweird.f32 %v1741_v44 }
 0x164   :  { %v837_v13 = vand.u32 2147483647, %v836_v7 }
 0x165   :  { %v924_v33 = vshll.u32 %v923_v46, 30  ;;  %vm856_vm14 = vcmp.eq.s32.totalorder %v851_v39, 2  ;;  %vm853_vm15 = vcmp.eq.s32.totalorder %v851_v39, 0  ;;  %vm852_vm0 = vcmp.lt.s32.totalorder %v851_v39, 2 }
 0x166   :  { %v840_v61 = vmul.f32 %v839_v29, %v837_v13  ;;  %v947_v1 = vsub.s32 4, %v923_v46 }
 0x167   :  { %v925_v37 = vsub.s32 %v921_v57, %v924_v33 }
 0x168   :  { %v841_v19 = vxor.u32 2147483648, %v840_v61  ;;  %v948_v41 = vsel %vm863_vm2, %v947_v1, %v923_v46 }
 0x169   :  { %v927_v62 = vsub.s32 0, %v925_v37 }
 0x16a   :  { %v842_v42 = vsel %vm759_vm11, %v841_v19, %v840_v61 }
 0x16b   :  { %v845_v32 = vsel %vm758_vm12, %v1690_v25, %v842_v42  ;;  %v1039_v34 = vmin.u32 %v927_v62, %v925_v37  ;;  %v950_v25 = vsel %vm862_vm3, 0, %v948_v41 }
 0x16c   :  { %1117 = vcosq.f32 %v845_v32  ;;  %v954_v2 = vadd.s32 3, %v950_v25 }
 0x16d   :  { %1119 = vsinq.f32 %v845_v32  ;;  %v929_v50 = vclz %v1039_v34 }
 0x16e   :  { %v955_v58 = vand.u32 3, %v954_v2 }
 0x16f   :  { %v1040_v5 = vadd.s32 4294967294, %v929_v50 }
 0x170   :  { %vm960_vm4 = vcmp.eq.s32.totalorder %v955_v58, 2  ;;  %vm957_vm5 = vcmp.eq.s32.totalorder %v955_v58, 0  ;;  %vm956_vm6 = vcmp.lt.s32.totalorder %v955_v58, 2 }
 0x171   :  { %vm1041_vm13 = vcmp.lt.s32.totalorder %v1040_v5, 0 }
 0x172   :  { %v932_v26 = vsel %vm1041_vm13, 0, %v1040_v5 }
 0x173   :  { %v933_v36 = vsub.s32 32, %v932_v26  ;;  %v937_v18 = vsub.s32 4294967266, %v932_v26  ;;  %v934_v45 = vshll.u32 %v925_v37, %v932_v26 }
 0x175   :  { %v935_v60 = vshrl.u32 %v917_v27, %v933_v36  ;;  %v938_v9 = vadd.s32 127, %v937_v18 }
 0x176   :  { %v1118_v38 = vpop.eup %1117 }
 0x177   :  { %v1120_v17 = vpop.eup %1119  ;;  %v857_v22 = vxor.u32 2147483648, %v1118_v38  ;;  %v936_v47 = vor.u32 %v935_v60, %v934_v45  ;;  %v939_v12 = vshll.u32 %v938_v9, 23 }
 0x178   :  { %v854_v6 = vxor.u32 2147483648, %v1120_v17 }
 0x179   :  { %v858_v4 = vsel %vm856_vm14, %v857_v22, %v1120_v17  ;;  %v940_v21 = vor.u32 4788187, %v939_v12  ;;  %v943_v16 = vcvt.s32.f32 %v936_v47 }
 0x17a   :  { %v855_v20 = vsel %vm853_vm15, %v1118_v38, %v854_v6 }
 0x17b   :  { %v859_v28 = vsel %vm852_vm0, %v855_v20, %v858_v4  ;;  %v941_v31 = vand.u32 2147483647, %v940_v21 }
 0x17c   :  { %v860_v35 = vsel %vm849_vm1, nan, %v859_v28 }
 0x17d   :  { %987 = vst [vmem:[#allocation5 + $0x70] sm:$0xff] %v860_v35  ;;  %v944_v55 = vmul.f32 %v943_v16, %v941_v31 }
 0x17f   :  { %v945_v23 = vxor.u32 2147483648, %v944_v55 }
 0x181   :  { %v946_v53 = vsel %vm863_vm2, %v945_v23, %v944_v55 }
 0x182   :  { %v949_v56 = vsel %vm862_vm3, %v1741_v44, %v946_v53 }
 0x183   :  { %1121 = vcosq.f32 %v949_v56 }
 0x184   :  { %1123 = vsinq.f32 %v949_v56 }
 0x18d   :  { %v1122_v10 = vpop.eup %1121 }
 0x18e   :  { %v1124_v40 = vpop.eup %1123  ;;  %v961_v24 = vxor.u32 2147483648, %v1122_v10 }
 0x18f   :  { %v958_v14 = vxor.u32 2147483648, %v1124_v40 }
 0x190   :  { %v962_v63 = vsel %vm960_vm4, %v961_v24, %v1124_v40 }
 0x191   :  { %v959_v59 = vsel %vm957_vm5, %v1122_v10, %v958_v14 }
 0x192   :  { %v963_v48 = vsel %vm956_vm6, %v959_v59, %v962_v63 }
 0x193   :  { %v964_v8 = vsel %vm953_vm7, nan, %v963_v48 }
 0x194   :  { %988 = vst [vmem:[#allocation5 + $0x78] sm:$0xff] %v964_v8 }
 0x195   :  { %1158 = shalt.err (!%p1155_p12)
}
 0x196   :  { %s1159_s6 = scalar_lea.hbm %s1885_s2, 2048 }
 0x197   :  { %p1160_p13 = scmp.ne.s32.totalorder %s1885_s2, %s1159_s6  ;;  %p1163_p0 = scmp.lt.u32.totalorder %s1159_s6, %s1885_s2 }
 0x199   :  { %p1165_p1 = pnand %p1163_p0, %p1160_p13 }
 0x19b   :  { %1168 = shalt.err (!%p1165_p1)
}
 0x19c   :  { %1000 = dma.vmem_to_hbm [thread:$0]  %s995_s30, 2048, %s1885_s2, [#allocation4], %s1174_s19, %s1174_s19, %s1175_s20  }
 0x19d   :  { %1171 = dma.done.wait [#allocation4], 2048  }
 0x19e   :  { %1172 = vsyncadd [#allocation4], 4294965248 }
 0x19f   :  { %1004 = vsyncpa [#allocation3], 1 }
 0x1a0   :  { %1005 = vsyncpa [#allocation4], 1 }

</bundles_post_ra>
